<compile_context>
chip_gen: v7x
topology: tpu7x:2x2x1
jax: 0.10.0
libtpu: 0.0.40
codegen_flags: <defaults>
</compile_context>

<pallas_src>
import functools

import jax
import jax.numpy as jnp
from jax.experimental import pallas as pl
from jax.experimental.pallas import tpu as pltpu


LANE = 128  # lane width / MXU alignment target


def _round_up(x: int, m: int) -> int:
    return pl.cdiv(x, m) * m


def _fused_head_kernel(x_ref, wf_ref, bf_ref, out_ref):
    """out = x @ Wf + bf   (fused fc1∘fc2; weight pre-transposed to [in, out]).

    x_ref  : [TB, Hp]  bf16
    wf_ref : [Hp, Cp]  bf16   (fused weight, VMEM-resident)
    bf_ref : [1,  Cp]  f32    (fused bias)
    out_ref: [TB, Cp]  f32
    """
    out_ref[...] = (
        jnp.dot(x_ref[...], wf_ref[...], preferred_element_type=jnp.float32)
        + bf_ref[...]
    ).astype(out_ref.dtype)


def prepare_classifier_params(w1, b1, w2, b2):
    """One-time host/device preprocessing of the static classifier parameters.

    w1: [H, H] f32 (PyTorch layout: [out, in]),  b1: [H] f32
    w2: [C, H] f32 (PyTorch layout: [out, in]),  b2: [C] f32

    Returns (wf_p, bf_p):
      wf_p: [Hp, Cp] bf16  zero-padded fused weight  (W1.T @ W2.T)
      bf_p: [1,  Cp] f32   zero-padded fused bias    (b1 @ W2.T + b2)
    Fusion is valid because the module applies no nonlinearity between fc1 and
    fc2 and dropout is identity in eval mode.
    """
    H = w1.shape[1]
    C = w2.shape[0]
    Hp = _round_up(H, LANE)
    Cp = _round_up(C, LANE)

    wf = w1.T.astype(jnp.float32) @ w2.T.astype(jnp.float32)     # [H, C], f32
    bf = b1.astype(jnp.float32) @ w2.T.astype(jnp.float32) + b2  # [C],    f32

    wf_p = jnp.zeros((Hp, Cp), jnp.bfloat16).at[:H, :C].set(wf.astype(jnp.bfloat16))
    bf_p = jnp.zeros((1, Cp), jnp.float32).at[0, :C].set(bf)
    return wf_p, bf_p


@functools.partial(jax.jit, static_argnames=("num_class", "block_b"))
def classifier_head(pooled, wf_p, bf_p, *, num_class, block_b=512):
    """Pallas fused classifier head.

    pooled: [B, H] activations (bf16 preferred; f32 is cast here).
    wf_p:   [Hp, Cp] bf16 fused weight (from prepare_classifier_params).
    bf_p:   [1,  Cp] f32  fused bias.
    Returns [B, num_class] f32 logits.
    """
    B, H = pooled.shape
    Hp, Cp = wf_p.shape

    if pooled.dtype != jnp.bfloat16:
        pooled = pooled.astype(jnp.bfloat16)

    # Balanced batch tiling: cap padding waste at < 1 tile, keep tiles sublane
    # aligned, and keep an even number of grid steps when >= 2 so v7x's two
    # TensorCores stay balanced under dimension_semantics=("parallel",).
    num_steps = pl.cdiv(B, block_b)
    if num_steps >= 2:
        num_steps = _round_up(num_steps, 2)
    tb = _round_up(pl.cdiv(B, num_steps), 8)
    Bp = tb * num_steps

    # Pad only when needed.  K (hidden) padding must be zeros for correctness;
    # padded batch rows are independent and get sliced off below.
    pad_b = Bp - B
    pad_h = Hp - H
    if pad_b or pad_h:
        x_p = jnp.pad(pooled, ((0, pad_b), (0, pad_h)))
    else:
        x_p = pooled

    cost = pl.CostEstimate(
        flops=2 * Bp * Hp * Cp,
        transcendentals=0,
        bytes_accessed=Bp * Hp * 2 + Hp * Cp * 2 + Cp * 4 + Bp * Cp * 4,
    )

    out_padded = pl.pallas_call(
        _fused_head_kernel,
        out_shape=jax.ShapeDtypeStruct((Bp, Cp), jnp.float32),
        grid_spec=pltpu.PrefetchScalarGridSpec(
            num_scalar_prefetch=0,
            grid=(num_steps,),
            in_specs=[
                pl.BlockSpec((tb, Hp), lambda i: (i, 0)),   # activations: tiled over B
                pl.BlockSpec((Hp, Cp), lambda i: (0, 0)),   # fused weight: VMEM-resident
                pl.BlockSpec((1, Cp), lambda i: (0, 0)),    # fused bias
            ],
            out_specs=pl.BlockSpec((tb, Cp), lambda i: (i, 0)),
        ),
        compiler_params=pltpu.CompilerParams(
            dimension_semantics=("parallel",),   # megacore-shardable batch axis
            vmem_limit_bytes=32 * 1024 * 1024,   # safe budget on v5e/v6e/v7x
        ),
        cost_estimate=cost,
    )(x_p, wf_p, bf_p)

    return out_padded[:B, :num_class]


def bert_pooled_surrogate(token_ids, embedding_table):
    """Deterministic stand-in for bert_model(token_ids)[1] (pooled output).
    Plain-JAX glue: embedding lookup + mean pooling over the sequence.
    Casts to bf16 at the producer so the head needs no extra cast pass."""
    emb = embedding_table[token_ids]                     # [B, S, H]
    return jnp.mean(emb, axis=1).astype(jnp.bfloat16)    # [B, H] bf16


def make_text_classifier(params, num_class):
    """Builds the forward fn; static weight prep happens once here."""
    wf_p, bf_p = prepare_classifier_params(
        params["fc1_w"], params["fc1_b"], params["fc2_w"], params["fc2_b"])

    def forward(token_ids):
        pooled = bert_pooled_surrogate(token_ids, params["embedding"])
        # dropout(p=0.4) -> identity in eval mode
        return classifier_head(pooled, wf_p, bf_p, num_class=num_class)

    return forward


def init_params(key, vocab_size, hidden_size, num_class):
    k_emb, k_w1, k_b1, k_w2, k_b2 = jax.random.split(key, 5)
    # PyTorch Linear default init: U(-1/sqrt(fan_in), 1/sqrt(fan_in))
    bound1 = 1.0 / jnp.sqrt(hidden_size)
    params = {
        "embedding": jax.random.normal(k_emb, (vocab_size, hidden_size),
                                       jnp.float32) * 0.02,
        "fc1_w": jax.random.uniform(k_w1, (hidden_size, hidden_size),
                                    jnp.float32, -bound1, bound1),
        "fc1_b": jax.random.uniform(k_b1, (hidden_size,),
                                    jnp.float32, -bound1, bound1),
        "fc2_w": jax.random.uniform(k_w2, (num_class, hidden_size),
                                    jnp.float32, -bound1, bound1),
        "fc2_b": jax.random.uniform(k_b2, (num_class,),
                                    jnp.float32, -bound1, bound1),
    }
    return params


if __name__ == "__main__":
    batch = 2
    seq = 8
    hidden_size = 32
    num_class = 4
    vocab_size = 50

    key = jax.random.PRNGKey(0)
    k_params, k_tok = jax.random.split(key)
    params = init_params(k_params, vocab_size, hidden_size, num_class)
    token_ids = jax.random.randint(k_tok, (batch, seq), 0, vocab_size,
                                   dtype=jnp.int32)

    forward = make_text_classifier(params, num_class)
    logits = forward(token_ids)
    jax.block_until_ready(logits)

    # Reference check in plain JAX (full f32 reference following the PyTorch
    # module: pooled -> fc1 -> fc2).  The kernel runs the fused affine map with
    # bf16 MXU inputs / f32 accumulation, so compare with bf16-level tolerance.
    pooled_f32 = jnp.mean(params["embedding"][token_ids], axis=1)
    ref_f32 = (pooled_f32 @ params["fc1_w"].T + params["fc1_b"]) \
        @ params["fc2_w"].T + params["fc2_b"]
    assert logits.shape == (batch, num_class)
    assert jnp.allclose(logits, ref_f32, atol=1e-2, rtol=1e-2), (
        jnp.max(jnp.abs(logits - ref_f32)))

    print("KERNEL_OK")
</pallas_src>

<mosaic_0001>
module attributes {stable_mosaic.version = 11 : i64} {
  func.func @_fused_head_kernel(%arg0: i32, %arg1: memref<8x128xbf16, #tpu.memory_space<vmem>>, %arg2: memref<128x128xbf16, #tpu.memory_space<vmem>>, %arg3: memref<1x128xf32, #tpu.memory_space<vmem>>, %arg4: memref<8x128xf32, #tpu.memory_space<vmem>>) attributes {dimension_semantics = [#tpu.dimension_semantics<parallel>], iteration_bounds = array<i64: 1>, scalar_prefetch = 0 : i64, scratch_operands = 0 : i64, tpu.core_type = #tpu.core_type<tc>, window_params = [{transform_indices = @transform_0, window_bounds = array<i64: 8, 128>}, {pipeline_mode = #tpu.pipeline_mode<synchronous>, transform_indices = @transform_1, window_bounds = array<i64: 128, 128>}, {pipeline_mode = #tpu.pipeline_mode<synchronous>, transform_indices = @transform_2, window_bounds = array<i64: 1, 128>}, {transform_indices = @transform_3, window_bounds = array<i64: 8, 128>}]} {
    %c0 = arith.constant 0 : index
    %c0_0 = arith.constant 0 : index
    %0 = vector.load %arg1[%c0, %c0_0] : memref<8x128xbf16, #tpu.memory_space<vmem>>, vector<8x128xbf16>
    %c0_1 = arith.constant 0 : index
    %c0_2 = arith.constant 0 : index
    %1 = vector.load %arg2[%c0_1, %c0_2] : memref<128x128xbf16, #tpu.memory_space<vmem>>, vector<128x128xbf16>
    %cst = arith.constant dense<0.000000e+00> : vector<8x128xf32>
    %2 = tpu.matmul %0, %1, %cst {dimension_numbers = #tpu.dot_dimension_numbers<[1], [0], [0], [1], [0, 0, 1, 1], [], []>} : vector<8x128xbf16>, vector<128x128xbf16>, vector<8x128xf32> -> vector<8x128xf32>
    %c0_3 = arith.constant 0 : index
    %c0_4 = arith.constant 0 : index
    %3 = vector.load %arg3[%c0_3, %c0_4] : memref<1x128xf32, #tpu.memory_space<vmem>>, vector<1x128xf32>
    %4 = vector.broadcast %3 : vector<1x128xf32> to vector<8x128xf32>
    %5 = arith.addf %2, %4 : vector<8x128xf32>
    %c0_5 = arith.constant 0 : index
    %c0_6 = arith.constant 0 : index
    %6 = vector.load %arg4[%c0_5, %c0_6] : memref<8x128xf32, #tpu.memory_space<vmem>>, vector<8x128xf32>
    tpu.vector_store %arg4[%c0_5, %c0_6], %5 {strides = array<i32>} : memref<8x128xf32, #tpu.memory_space<vmem>>, vector<8x128xf32>,
    return
  }
  func.func @transform_0(%arg0: i32) -> (i32, i32) {
    %c0_i32 = arith.constant 0 : i32
    %c0_i32_0 = arith.constant 0 : i32
    return %arg0, %c0_i32 : i32, i32
  }
  func.func @transform_1(%arg0: i32) -> (i32, i32) {
    %c0_i32 = arith.constant 0 : i32
    %c0_i32_0 = arith.constant 0 : i32
    %c0_i32_1 = arith.constant 0 : i32
    return %c0_i32, %c0_i32_0 : i32, i32
  }
  func.func @transform_2(%arg0: i32) -> (i32, i32) {
    %c0_i32 = arith.constant 0 : i32
    %c0_i32_0 = arith.constant 0 : i32
    %c0_i32_1 = arith.constant 0 : i32
    return %c0_i32, %c0_i32_0 : i32, i32
  }
  func.func @transform_3(%arg0: i32) -> (i32, i32) {
    %c0_i32 = arith.constant 0 : i32
    %c0_i32_0 = arith.constant 0 : i32
    return %arg0, %c0_i32 : i32, i32
  }
}

</mosaic_0001>

<bundles_post_ra>
// kernel: classifier_head.1
= control target key start
LH: loop header
LB: loop body
LE: loop exit
PB: predicated region body
PF: predicated region fallthrough
CT: control target
= control target key end

     0   :  { %8 = vsyncpa [#allocation3], 0  ;;  %s222_s12 = smov [#allocation2]   ;;  %s268_s0 = inlined_call_operand.vmem [shape: bf16[8,128], index: 0, kind: input, shape index: {}]   ;;  %s269_s1 = inlined_call_operand.hbm [shape: bf16[128,128], index: 1, kind: input, shape index: {}]   ;;  %s270_s2 = inlined_call_operand.vmem [shape: f32[1,128], index: 2, kind: input, shape index: {}]   ;;  %s271_s3 = inlined_call_operand.vmem [shape: f32[8,128], index: 3, kind: output, shape index: {}]  }
   0x1   :  { %s16_s13 = sshll.u32 %s222_s12, 4  ;;  %s198_s16 = scalar_lea.hbm %s269_s1, 1024  ;;  %s17_s13 = int_to_ptr.vmem [resolvable:$true] %s16_s13 }
   0x2   :  { %p199_p0 = scmp.ne.s32.totalorder %s269_s1, %s198_s16  ;;  %p202_p1 = scmp.lt.u32.totalorder %s198_s16, %s269_s1 }
   0x4   :  { %p204_p2 = pnand %p202_p1, %p199_p0 }
   0x6   :  { %207 = shalt.err (!%p204_p2)
}
   0x7   :  { %s208_s21 = scalar_lea.vmem %s17_s13, 1024  ;;  %p213_p4 = scmp.lt.s32.totalorder %s17_s13, %s17_s13 }
   0x8   :  { %p209_p3 = scmp.ne.s32.totalorder %s17_s13, %s208_s21  ;;  %p214_p5 = scmp.lt.s32.totalorder %s208_s21, %s208_s21 }
   0xa   :  { %p215_p6 = por %p214_p5, %p213_p4 }
   0xc   :  { %p216_p7 = pnand %p215_p6, %p209_p3 }
   0xe   :  { %219 = shalt.err (!%p216_p7)
}
   0xf   :  { %s223_s22 = smov 64   ;;  %s224_s23 = smov 4  }
  0x10   :  { %22 = dma.hbm_to_vmem [thread:$0]  %s269_s1, 1024, %s17_s13, [#allocation3], %s223_s22, %s223_s22, %s224_s23  }
  0x11   :  { %220 = dma.done.wait [#allocation3], 1024  }
  0x12   :  { %221 = vsyncadd [#allocation3], 4294966272  ;;  %v225_v0 = vmov 0.0   ;;  %vm226_vm0 = vmmov 0   ;;  %v190_v1 = vld [vmem:[#allocation2] sm:$0xff]   ;;  %v191_v2 = vld [vmem:[#allocation2 + $0x8] sm:$0xff]  }
  0x13   :  { %165 = vmatprep.subr.bf16.mxu0 %v225_v0  ;;  %181 = vmatprep.mubr.msk.bf16.mxu0 %vm226_vm0, %v225_v0  ;;  %v192_v3 = vld [vmem:[#allocation2 + $0x10] sm:$0xff]   ;;  %v193_v4 = vld [vmem:[#allocation2 + $0x18] sm:$0xff]   ;;  %v194_v5 = vld [vmem:[#allocation2 + $0x20] sm:$0xff]  }
  0x14   :  { %166 = vmatpush3.bf16.msra.mxu0 %v190_v1  ;;  %v195_v6 = vld [vmem:[#allocation2 + $0x28] sm:$0xff]   ;;  %v196_v7 = vld [vmem:[#allocation2 + $0x30] sm:$0xff]   ;;  %v197_v8 = vld [vmem:[#allocation2 + $0x38] sm:$0xff]  }
  0x15   :  { %167 = vmatprep.subr.bf16.mxu0 %v225_v0  ;;  %v29_v9 = vld [vmem:[%s268_s0] sm:$0xf] }
  0x16   :  { %v147_v10 = vld [vmem:[%s270_s2] ss:$0 sm:$0xff] }
  0x18   :  { %168 = vmatpush3.bf16.msra.mxu0 %v191_v2 }
  0x19   :  { %169 = vmatprep.subr.bf16.mxu0 %v225_v0 }
  0x1c   :  { %170 = vmatpush3.bf16.msra.mxu0 %v192_v3 }
  0x1d   :  { %171 = vmatprep.subr.bf16.mxu0 %v225_v0 }
  0x20   :  { %172 = vmatpush3.bf16.msra.mxu0 %v193_v4 }
  0x21   :  { %173 = vmatprep.subr.bf16.mxu0 %v225_v0 }
  0x24   :  { %174 = vmatpush3.bf16.msra.mxu0 %v194_v5 }
  0x25   :  { %175 = vmatprep.subr.bf16.mxu0 %v225_v0 }
  0x28   :  { %176 = vmatpush3.bf16.msra.mxu0 %v195_v6 }
  0x29   :  { %177 = vmatprep.subr.bf16.mxu0 %v225_v0 }
  0x2c   :  { %178 = vmatpush3.bf16.msra.mxu0 %v196_v7 }
  0x2d   :  { %179 = vmatprep.subr.bf16.mxu0 %v225_v0 }
  0x30   :  { %180 = vmatpush3.bf16.msra.mxu0 %v197_v8 }
  0x33   :  { %182 = vmatmul.mubr.bf16.vlgmr.msra.gmra.mrb[0].mxu0 %v29_v9 }
 0x106   :  { %v135_v11 = vpop.f32.mrb[0].mxu0 }
 0x107   :  { %v136_v12 = vadd.f32 %v147_v10, %v135_v11  ;;  %v183_v13 = vpop.f32.mrb[1].mxu0 }
 0x108   :  { %v138_v14 = vpop.f32.mrb[2].mxu0 }
 0x109   :  { %141 = vst [vmem:[%s271_s3] sm:$0xff] %v136_v12  ;;  %v184_v15 = vpop.f32.mrb[3].mxu0 }
 0x10a   :  { %146 = vsyncpa [#allocation3], 1 }

</bundles_post_ra>
